<compile_context>
chip_gen: v6e
topology: v6e:2x2x1
jax: 0.10.0
libtpu: 0.0.40
codegen_flags: <defaults>
</compile_context>

<pallas_src>
import jax
import jax.numpy as jnp
from jax.experimental import pallas as pl
from jax.experimental.pallas import tpu as pltpu


def _round_up(n, m):
    return ((n + m - 1) // m) * m


# ---------------------------------------------------------------------------
# Kernels
# ---------------------------------------------------------------------------

def _lowrank_kernel(x_ref, a_t_ref, a_bias_ref, b_t_ref, o_ref):
    # x_ref:      (TM, in_dim)
    # a_t_ref:    (in_dim, rank)    pre-transposed A (without its bias column)
    # a_bias_ref: (1, rank)         folded ones-column of A
    # b_t_ref:    (rank, out_last)  pre-transposed B (maybe lane-padded)
    # o_ref:      (TM, out_last)
    h = jnp.dot(x_ref[...], a_t_ref[...], preferred_element_type=jnp.float32)
    h = h + a_bias_ref[...]
    y = jnp.dot(h, b_t_ref[...], preferred_element_type=jnp.float32)
    o_ref[...] = jnp.maximum(y, 0.0).astype(o_ref.dtype)


def _fused_kernel(x_ref, w_ref, bias_ref, o_ref):
    # x_ref:    (TM, in_dim)
    # w_ref:    (in_dim, out_last)  W_eff = A[:, :in_dim].T @ B.T
    # bias_ref: (1, out_last)       b_eff = A[:,  in_dim]  @ B.T
    # o_ref:    (TM, out_last)
    y = jnp.dot(x_ref[...], w_ref[...], preferred_element_type=jnp.float32)
    y = y + bias_ref[...]
    o_ref[...] = jnp.maximum(y, 0.0).astype(o_ref.dtype)


# ---------------------------------------------------------------------------
# Generation-aware planning helpers
# ---------------------------------------------------------------------------

def _vmem_capacity_bytes():
    try:
        return int(pltpu.get_tpu_info().vmem_capacity_bytes)
    except Exception:
        return 64 * 1024 * 1024  # conservative fallback (v7x per-core size)


def _batch_dimension_semantics():
    # v7x has 2 TensorCores/chip: only CORE_PARALLEL actually shards a grid
    # axis across them.  Other generations keep plain "parallel".
    try:
        kind = jax.devices()[0].device_kind.lower()
    except Exception:
        kind = ""
    if "v7" in kind or "7x" in kind:
        return (pltpu.CORE_PARALLEL,)
    return ("parallel",)


def _pick_tile(batch, row_lanes, weight_bytes, capacity, dtype_bytes=4):
    """Largest 8-aligned batch tile fitting a generation-aware VMEM budget.

    row_lanes: lane-padded f32 words touched per batch row across the blocked
    operands (x tile, out tile, low-rank intermediate).  Each is charged 3x:
    two pipeline buffers plus one f32 compute temporary.  Resident weights are
    charged 2x (default double-buffering), plus fixed compiler headroom.
    """
    headroom = 2 * 1024 * 1024
    budget = int(capacity * 0.55) - 2 * weight_bytes - headroom
    budget = max(budget, 512 * 1024)
    per_row = 3 * row_lanes * dtype_bytes
    tm = budget // max(per_row, 1)
    tm = max(8, min((tm // 8) * 8, 4096))
    tm = min(tm, _round_up(batch, 8))
    return max(8, tm)


# ---------------------------------------------------------------------------
# Wrapper
# ---------------------------------------------------------------------------

def lowrank_linear_relu(x, w_a, w_b, fold=None):
    """relu((cat[x, 1] @ w_a.T) @ w_b.T).

    x: (batch, in_dim); w_a: (rank, in_dim + 1); w_b: (out_dim, rank).
    fold=None auto-selects between the low-rank (two-matmul) kernel and the
    exact single-matmul rewrite with W_eff = w_a[:, :in].T @ w_b.T.
    """
    batch, in_dim = x.shape
    rank = w_a.shape[0]
    out_dim = w_b.shape[0]
    assert w_a.shape[1] == in_dim + 1
    assert w_b.shape[1] == rank

    capacity = _vmem_capacity_bytes()

    # Decide on folding the two linears into one (exact: ReLU follows both).
    if fold is None:
        fused_w_bytes = 4 * in_dim * _round_up(out_dim, 128)
        # Fused per-row arithmetic intensity vs a conservative HBM ridge.
        intensity = (2.0 * in_dim * out_dim) / (4.0 * (in_dim + out_dim))
        fold = (fused_w_bytes <= 4 * 1024 * 1024) and (intensity <= 128.0)

    # Lane-dense output only when padding overhead is modest (<= 2x writes).
    out_pad = _round_up(out_dim, 128)
    pad_out = (out_pad != out_dim) and (out_pad <= 2 * out_dim)
    out_last = out_pad if pad_out else out_dim

    # Fold the ones-column: A(cat(x,1)) == x @ A[:, :in].T + A[:, in].
    a_t = jnp.transpose(w_a[:, :in_dim])            # (in_dim, rank)
    a_bias = w_a[:, in_dim][None, :]                # (1, rank)
    b_t = jnp.transpose(w_b)                        # (rank, out_dim)
    if out_last != out_dim:
        b_t = jnp.pad(b_t, ((0, 0), (0, out_last - out_dim)))

    in_lanes = _round_up(in_dim, 128)
    out_lanes = _round_up(out_last, 128)
    rank_lanes = _round_up(rank, 128)

    if fold:
        # Tiny, one-time precompute at full f32 precision (wrapper side).
        w_eff = jnp.dot(a_t, b_t, precision=jax.lax.Precision.HIGHEST,
                        preferred_element_type=jnp.float32).astype(x.dtype)
        b_eff = jnp.dot(a_bias, b_t, precision=jax.lax.Precision.HIGHEST,
                        preferred_element_type=jnp.float32).astype(x.dtype)
        kernel = _fused_kernel
        operands = (w_eff, b_eff)
        weight_specs = [
            pl.BlockSpec((in_dim, out_last), lambda i: (0, 0)),
            pl.BlockSpec((1, out_last), lambda i: (0, 0)),
        ]
        weight_bytes = 4 * (in_dim * out_lanes + out_lanes)
        row_lanes = in_lanes + out_lanes
        flops = 2 * batch * in_dim * out_last + 2 * batch * out_last
        bytes_accessed = 4 * (batch * in_dim + in_dim * out_last + out_last
                              + batch * out_last)
    else:
        kernel = _lowrank_kernel
        operands = (a_t, a_bias, b_t)
        weight_specs = [
            pl.BlockSpec((in_dim, rank), lambda i: (0, 0)),
            pl.BlockSpec((1, rank), lambda i: (0, 0)),
            pl.BlockSpec((rank, out_last), lambda i: (0, 0)),
        ]
        weight_bytes = 4 * (in_dim * rank_lanes + rank_lanes + rank * out_lanes)
        row_lanes = in_lanes + out_lanes + rank_lanes
        flops = (2 * batch * in_dim * rank + 2 * batch * rank * out_last
                 + batch * (rank + out_last))
        bytes_accessed = 4 * (batch * in_dim + in_dim * rank + rank
                              + rank * out_last + batch * out_last)

    # Batch tiling: no padding, ragged last block is masked by Pallas.
    tm = _pick_tile(batch, row_lanes, weight_bytes, capacity)
    grid = (pl.cdiv(batch, tm),)

    vmem_limit = 2 * weight_bytes + 3 * 4 * row_lanes * tm + 4 * 1024 * 1024
    vmem_limit = max(vmem_limit, 32 * 1024 * 1024)
    vmem_limit = min(vmem_limit, int(capacity * 0.85))

    out = pl.pallas_call(
        kernel,
        out_shape=jax.ShapeDtypeStruct((batch, out_last), x.dtype),
        grid_spec=pltpu.PrefetchScalarGridSpec(
            num_scalar_prefetch=0,
            grid=grid,
            in_specs=[pl.BlockSpec((tm, in_dim), lambda i: (i, 0))] + weight_specs,
            out_specs=pl.BlockSpec((tm, out_last), lambda i: (i, 0)),
        ),
        compiler_params=pltpu.CompilerParams(
            dimension_semantics=_batch_dimension_semantics(),
            vmem_limit_bytes=vmem_limit,
        ),
        cost_estimate=pl.CostEstimate(
            flops=int(flops), transcendentals=0,
            bytes_accessed=int(bytes_accessed)),
    )(x, *operands)

    if out_last != out_dim:
        out = out[:, :out_dim]
    return out


if __name__ == "__main__":
    # Small, deterministic problem consistent with the module's forward.
    batch, in_dim, out_dim, rank = 8, 32, 16, 4

    key = jax.random.PRNGKey(0)
    kx, ka, kb = jax.random.split(key, 3)

    x = jax.random.normal(kx, (batch, in_dim), dtype=jnp.float32)
    # nn.Linear weights: (out_features, in_features), bias=False.
    w_a = jax.random.normal(ka, (rank, in_dim + 1), dtype=jnp.float32) * 0.1
    w_b = jax.random.normal(kb, (out_dim, rank), dtype=jnp.float32) * 0.1

    # Reference in plain JAX (same math as the PyTorch module).
    x_aug = jnp.concatenate([x, jnp.ones((batch, 1), dtype=x.dtype)], axis=1)
    ref = jnp.maximum(x_aug @ w_a.T @ w_b.T, 0.0)

    # Auto path (folds the two linears at this tiny rank).
    out = jax.block_until_ready(lowrank_linear_relu(x, w_a, w_b))
    assert out.shape == (batch, out_dim)
    assert jnp.allclose(out, ref, atol=1e-5, rtol=1e-5)

    # Explicit low-rank (two-matmul) path exercised as well.
    out_lr = jax.block_until_ready(lowrank_linear_relu(x, w_a, w_b, fold=False))
    assert out_lr.shape == (batch, out_dim)
    assert jnp.allclose(out_lr, ref, atol=1e-5, rtol=1e-5)

    print("KERNEL_OK")
</pallas_src>

<mosaic_0001>
module attributes {stable_mosaic.version = 11 : i64} {
  func.func @_fused_kernel(%arg0: i32, %arg1: memref<8x32xf32, #tpu.memory_space<vmem>>, %arg2: memref<32x16xf32, #tpu.memory_space<vmem>>, %arg3: memref<1x16xf32, #tpu.memory_space<vmem>>, %arg4: memref<8x16xf32, #tpu.memory_space<vmem>>) attributes {dimension_semantics = [#tpu.dimension_semantics<parallel>], iteration_bounds = array<i64: 1>, scalar_prefetch = 0 : i64, scratch_operands = 0 : i64, tpu.core_type = #tpu.core_type<tc>, window_params = [{transform_indices = @transform_0, window_bounds = array<i64: 8, 32>}, {pipeline_mode = #tpu.pipeline_mode<synchronous>, transform_indices = @transform_1, window_bounds = array<i64: 32, 16>}, {pipeline_mode = #tpu.pipeline_mode<synchronous>, transform_indices = @transform_2, window_bounds = array<i64: 1, 16>}, {transform_indices = @transform_3, window_bounds = array<i64: 8, 16>}]} {
    %c0 = arith.constant 0 : index
    %c0_0 = arith.constant 0 : index
    %0 = vector.load %arg1[%c0, %c0_0] : memref<8x32xf32, #tpu.memory_space<vmem>>, vector<8x32xf32>
    %c0_1 = arith.constant 0 : index
    %c0_2 = arith.constant 0 : index
    %1 = vector.load %arg2[%c0_1, %c0_2] : memref<32x16xf32, #tpu.memory_space<vmem>>, vector<32x16xf32>
    %cst = arith.constant dense<0.000000e+00> : vector<8x16xf32>
    %2 = tpu.matmul %0, %1, %cst {dimension_numbers = #tpu.dot_dimension_numbers<[1], [0], [0], [1], [0, 0, 1, 1], [], []>} : vector<8x32xf32>, vector<32x16xf32>, vector<8x16xf32> -> vector<8x16xf32>
    %c0_3 = arith.constant 0 : index
    %c0_4 = arith.constant 0 : index
    %3 = vector.load %arg3[%c0_3, %c0_4] : memref<1x16xf32, #tpu.memory_space<vmem>>, vector<1x16xf32>
    %4 = vector.broadcast %3 : vector<1x16xf32> to vector<8x16xf32>
    %5 = arith.addf %2, %4 : vector<8x16xf32>
    %cst_5 = arith.constant 0.000000e+00 : f32
    %6 = vector.broadcast %cst_5 : f32 to vector<8x16xf32>
    %7 = arith.maximumf %5, %6 : vector<8x16xf32>
    %c0_6 = arith.constant 0 : index
    %c0_7 = arith.constant 0 : index
    %8 = vector.load %arg4[%c0_6, %c0_7] : memref<8x16xf32, #tpu.memory_space<vmem>>, vector<8x16xf32>
    tpu.vector_store %arg4[%c0_6, %c0_7], %7 {strides = array<i32>} : memref<8x16xf32, #tpu.memory_space<vmem>>, vector<8x16xf32>,
    return
  }
  func.func @transform_0(%arg0: i32) -> (i32, i32) {
    %c0_i32 = arith.constant 0 : i32
    %c0_i32_0 = arith.constant 0 : i32
    return %arg0, %c0_i32 : i32, i32
  }
  func.func @transform_1(%arg0: i32) -> (i32, i32) {
    %c0_i32 = arith.constant 0 : i32
    %c0_i32_0 = arith.constant 0 : i32
    %c0_i32_1 = arith.constant 0 : i32
    return %c0_i32, %c0_i32_0 : i32, i32
  }
  func.func @transform_2(%arg0: i32) -> (i32, i32) {
    %c0_i32 = arith.constant 0 : i32
    %c0_i32_0 = arith.constant 0 : i32
    %c0_i32_1 = arith.constant 0 : i32
    return %c0_i32, %c0_i32_0 : i32, i32
  }
  func.func @transform_3(%arg0: i32) -> (i32, i32) {
    %c0_i32 = arith.constant 0 : i32
    %c0_i32_0 = arith.constant 0 : i32
    return %arg0, %c0_i32 : i32, i32
  }
}

</mosaic_0001>

<bundles_post_ra>
// kernel: tpu_custom_call.1
= control target key start
LH: loop header
LB: loop body
LE: loop exit
PB: predicated region body
PF: predicated region fallthrough
CT: control target
= control target key end

     0   :  { %v161_v1 = vmov 0.0   ;;  %vm162_vm0 = vmmov 0   ;;  %s205_s0 = inlined_call_operand.vmem [shape: f32[8,32], index: 0, kind: input, shape index: {}]   ;;  %s206_s1 = inlined_call_operand.vmem [shape: f32[32,16], index: 1, kind: input, shape index: {}]   ;;  %s207_s2 = inlined_call_operand.vmem [shape: f32[1,16], index: 2, kind: input, shape index: {}]   ;;  %s208_s3 = inlined_call_operand.hbm [shape: f32[8,16], index: 3, kind: output, shape index: {}]  }
   0x1   :  { %v19_v0 = vld [vmem:[%s206_s1 + $0x18] sm:$0xff]  ;;  %125 = vmatprep.subr.mxu0 %v161_v1  ;;  %v18_v2 = vld [vmem:[%s206_s1 + $0x10] sm:$0xff]  ;;  %133 = vmatprep.mubr.msk.f32.mxu0 %vm162_vm0, %v161_v1 }
   0x2   :  { %126 = vmatpush3.msra.mxu0 %v19_v0 }
   0x3   :  { %8 = vsyncpa [#allocation3], 0  ;;  %127 = vmatprep.subr.mxu0 %v161_v1  ;;  %v17_v3 = vld [vmem:[%s206_s1 + $0x8] sm:$0xff]  ;;  %v16_v4 = vld [vmem:[%s206_s1] sm:$0xff]  ;;  %vm27_vm1 = vcmask 261120   ;;  %s163_s24 = smov [#allocation2]  }
   0x4   :  { %128 = vmatpush3.msra.mxu0 %v18_v2  ;;  %v15_v5 = vld [vmem:[%s205_s0] sm:$0xff]  ;;  %s110_s25 = sshll.u32 %s163_s24, 4  ;;  %vm102_vm2 = vcmask 130048   ;;  %s111_s25 = int_to_ptr.vmem [resolvable:$true] %s110_s25 }
   0x5   :  { %129 = vmatprep.subr.mxu0 %v161_v1  ;;  %v118_v6 = vld [vmem:[%s207_s2] ss:$0 sm:$0xff]  ;;  %s139_s1 = scalar_lea.vmem %s111_s25, 128  ;;  %p144_p1 = scmp.lt.s32.totalorder %s111_s25, %s111_s25 }
   0x6   :  { %130 = vmatpush3.msra.mxu0 %v17_v3  ;;  %p140_p0 = scmp.ne.s32.totalorder %s111_s25, %s139_s1  ;;  %p145_p2 = scmp.lt.s32.totalorder %s139_s1, %s139_s1 }
   0x7   :  { %131 = vmatprep.subr.mxu0 %v161_v1 }
   0x8   :  { %132 = vmatpush3.msra.mxu0 %v16_v4  ;;  %p146_p3 = por %p145_p2, %p144_p1 }
   0x9   :  { %134 = vmatmul.mubr.msk.f32.vlgmr.msra.gmra.mxu0 %vm27_vm1, %v15_v5 }
   0xa   :  { %p147_p4 = pnand %p146_p3, %p140_p0 }
  0xc9   :  { %v97_v7 = vpop.f32.mrf.mxu0 }
  0xca   :  { %v98_v8 = vadd.f32 %v118_v6, %v97_v7 }
  0xcb   :  { %v135_v9 = vpop.f32.mrf.mxu0 }
  0xcc   :  { %v101_v10 = vmax.f32 %v98_v8, 0.0 }
  0xce   :  { %103 = vst.msk [vmem:[#allocation2] sm:$0xff] %vm102_vm2, %v101_v10 }
  0xcf   :  { %150 = shalt.err (!%p147_p4)
}
  0xd0   :  { %113 = dma.vmem_to_hbm [thread:$0]  %s111_s25, 128, %s208_s3, [#allocation3]  }
  0xd1   :  { %159 = dma.done.wait [#allocation3], 128  }
  0xd2   :  { %160 = vsyncadd [#allocation3], 4294967168 }
  0xd3   :  { %117 = vsyncpa [#allocation3], 1 }

</bundles_post_ra>
